<compile_context>
chip_gen: v6e
topology: v6e:2x2x1
jax: 0.10.0
libtpu: 0.0.40
codegen_flags: <defaults>
</compile_context>

<pallas_src>
import functools

import jax
import jax.numpy as jnp
from jax.experimental import pallas as pl
from jax.experimental.pallas import tpu as pltpu

NEG_SLOPE = 0.01   # F.leaky_relu default
BN_EPS = 1e-5      # BatchNorm1d default eps
OUT_LANES = 128    # lane-dense output row width


def _leaky(v):
    return jnp.where(v >= 0, v, NEG_SLOPE * v)


# ---------------------------------------------------------------------------
# Kernel: all G graphs in one step, channel-major [C, G*N] layout throughout.
# ---------------------------------------------------------------------------
def _gnn_kernel(x_ref, adj_ref, avg_ref, wfin_ref, p_ref, out_ref, *, C):
    xt = x_ref[...]          # [1, GN]        all graphs' node features (lanes)
    adj_t = adj_ref[...]     # [GN, GN]       block-diagonal A_hat^T
    avg_p = avg_ref[...]     # [GN, GN]       per-graph mean projector (1/N blocks)
    w_fin = wfin_ref[...]    # [GN, OUT_LANES] final Linear(F,1) weight, lane-padded
    P = p_ref[...]           # [P_ROWS, GN]   pre-broadcast parameter slabs

    # Static row-slices only -- no single-lane reads, no in-kernel broadcasts.
    w1, b1, g1, be1, lt1w, w2, b2, g2, be2, lt2w = (
        P[k * C:(k + 1) * C] for k in range(10))            # [C, GN] each
    lt1b = P[10 * C + 0:10 * C + 1]                          # [1, GN]
    lt2b = P[10 * C + 1:10 * C + 2]
    linb = P[10 * C + 2:10 * C + 3]

    def gcn_bn_act(xrow, w, b, g, be):
        # rank-1 GCNConv (in_channels=1) for ALL graphs: one MXU push.
        s = jnp.dot(xrow, adj_t, preferred_element_type=jnp.float32)   # [1, GN]
        h = w * s + b                                                  # [C, GN]
        # per-graph BatchNorm1d (training-mode batch stats) via projector
        # matmuls -- keeps the layout stable and uses the otherwise-idle MXU.
        mu = jnp.dot(h, avg_p, preferred_element_type=jnp.float32)     # [C, GN]
        d = h - mu
        var = jnp.dot(d * d, avg_p, preferred_element_type=jnp.float32)
        return _leaky(d * jax.lax.rsqrt(var + BN_EPS) * g + be)        # [C, GN]

    # gnn1 + per-node Linear(C,1) head
    h1 = gcn_bn_act(xt, w1, b1, g1, be1)
    t1 = _leaky(jnp.sum(h1 * lt1w, axis=0, keepdims=True) + lt1b)      # [1, GN]
    # gnn2 + per-node Linear(C,1) head
    h2 = gcn_bn_act(t1, w2, b2, g2, be2)
    t2 = _leaky(jnp.sum(h2 * lt2w, axis=0, keepdims=True) + lt2b)      # [1, GN]
    # final Linear(F,1): one matmul -> lane-dense [1, 128] row, written once.
    out = jnp.dot(t2, w_fin, preferred_element_type=jnp.float32) + linb
    out_ref[...] = _leaky(out)


# ---------------------------------------------------------------------------
# Parameter packing: pre-broadcast every per-channel tensor to a lane-dense
# [C, GN] slab so the kernel only does static row slices.
#   rows [k*C, (k+1)*C), k=0..9 : w1,b1,g1,be1,lt1_w, w2,b2,g2,be2,lt2_w
#   rows 10C,10C+1,10C+2        : lt1_b, lt2_b, lin_b (broadcast to all lanes)
# ---------------------------------------------------------------------------
def _pack_params(p, C, GN):
    def slab(v):                                  # (1, C) -> (C, GN)
        return jnp.broadcast_to(v.reshape(C, 1).astype(jnp.float32), (C, GN))

    def row(s):                                   # scalar -> (1, GN)
        return jnp.full((1, GN), s, jnp.float32)

    rows = [slab(p[k]) for k in
            ("w1", "b1", "g1", "be1", "lt1_w", "w2", "b2", "g2", "be2", "lt2_w")]
    rows += [row(p["lt1_b"][0, 0]), row(p["lt2_b"][0, 0]), row(p["lin_b"][0, 0])]
    packed = jnp.concatenate(rows, axis=0)
    pad = (-packed.shape[0]) % 8
    if pad:
        packed = jnp.concatenate([packed, jnp.zeros((pad, GN), jnp.float32)], 0)
    return packed


@functools.partial(jax.jit, static_argnames=("batch", "num_features", "hidden"))
def gnn_pallas(adj, x, params, *, batch, num_features, hidden):
    """adj: [G, N, N] normalized adjacency, x: [G, N, 1] node features."""
    G, N, _ = adj.shape
    assert N == batch * num_features
    C, B, F = hidden, batch, num_features
    GN = G * N
    assert G * B <= OUT_LANES

    packed = _pack_params(params, C, GN)                      # [P_ROWS, GN]
    x_row = x.reshape(1, GN)                                  # lanes = all nodes

    # Block-diagonal A_hat^T over all graphs (one 128x128 MXU tile for G=4,N=32).
    adj_t = jnp.swapaxes(adj, -1, -2)
    adj_bd = (jnp.eye(G, dtype=jnp.float32)[:, None, :, None]
              * adj_t[:, :, None, :]).reshape(GN, GN)

    # Per-graph averaging projector: avg_p[i, j] = 1/N if same graph else 0.
    gid = jnp.arange(GN, dtype=jnp.int32) // N
    avg_p = (gid[:, None] == gid[None, :]).astype(jnp.float32) / N

    # Final Linear(F,1) folded into a lane-padded [GN, 128] weight:
    #   column g*B+b picks up lin_w[f] from row g*N + b*F + f.
    ridx = jnp.arange(GN, dtype=jnp.int32)
    col = (ridx // N) * B + (ridx % N) // F
    w_fin = jnp.zeros((GN, OUT_LANES), jnp.float32).at[ridx, col].set(
        params["lin_w"].astype(jnp.float32)[ridx % F])

    kernel = functools.partial(_gnn_kernel, C=C)
    out = pl.pallas_call(
        kernel,
        out_shape=jax.ShapeDtypeStruct((1, OUT_LANES), jnp.float32),
        grid=(1,),                               # single step: no per-graph overhead
        in_specs=[
            pl.BlockSpec((1, GN), lambda i: (0, 0)),
            pl.BlockSpec((GN, GN), lambda i: (0, 0)),
            pl.BlockSpec((GN, GN), lambda i: (0, 0)),
            pl.BlockSpec((GN, OUT_LANES), lambda i: (0, 0)),
            pl.BlockSpec((packed.shape[0], GN), lambda i: (0, 0)),
        ],
        out_specs=pl.BlockSpec((1, OUT_LANES), lambda i: (0, 0)),
        compiler_params=pltpu.CompilerParams(
            dimension_semantics=("arbitrary",)),
    )(x_row, adj_bd, avg_p, w_fin, packed)
    return out[0, :G * B].reshape(G, B, 1)


# ---------------------------------------------------------------------------
# Glue: edge_index -> dense symmetric-normalized adjacency (gcn_norm w/ loops).
# NOTE: duplicate edges are deduplicated (set, not scatter-add); fine for the
# test graphs below.  TODO(synk): scatter-add multi-edge weights if needed.
# ---------------------------------------------------------------------------
def gcn_norm_adj(edge_index, num_nodes):
    src, dst = edge_index[0], edge_index[1]
    a = jnp.zeros((num_nodes, num_nodes), jnp.float32).at[dst, src].set(1.0)
    a = a + jnp.eye(num_nodes, dtype=jnp.float32)
    deg = a.sum(axis=1)
    dinv = jax.lax.rsqrt(deg)
    return dinv[:, None] * a * dinv[None, :]


# Pure-JAX reference of the same forward pass (node-major, one graph at a time).
def gnn_ref(adj_g, x_g, p, batch, num_features):
    def gcn_bn_act(xin, w, b, g, be):
        h = adj_g @ (xin @ w) + b
        mu = h.mean(0, keepdims=True)
        var = ((h - mu) ** 2).mean(0, keepdims=True)
        return _leaky((h - mu) / jnp.sqrt(var + BN_EPS) * g + be)

    h1 = gcn_bn_act(x_g, p["w1"], p["b1"], p["g1"], p["be1"])
    t1 = _leaky(h1 @ p["lt1_w"].T + p["lt1_b"])
    h2 = gcn_bn_act(t1, p["w2"], p["b2"], p["g2"], p["be2"])
    t2 = _leaky(h2 @ p["lt2_w"].T + p["lt2_b"])
    u = t2.reshape(batch, num_features)
    return _leaky(u @ p["lin_w"][:, None] + p["lin_b"])


if __name__ == "__main__":
    B, F, C = 2, 16, 5          # batch, num_features, hidden/out channels
    N = B * F                   # nodes per graph
    G = 4                       # graphs; G*N = 128 (one full MXU tile / vreg row)

    key = jax.random.PRNGKey(0)
    ks = jax.random.split(key, 12)

    # Deterministic parameter init (fresh-init semantics; BN gamma=1, beta=0).
    params = {
        "w1": jax.random.normal(ks[0], (1, C), jnp.float32),
        "b1": 0.1 * jax.random.normal(ks[1], (1, C), jnp.float32),
        "g1": jnp.ones((1, C), jnp.float32),
        "be1": jnp.zeros((1, C), jnp.float32),
        "lt1_w": jax.random.normal(ks[2], (1, C), jnp.float32) / jnp.sqrt(C),
        "lt1_b": 0.1 * jax.random.normal(ks[3], (1, 1), jnp.float32),
        "w2": jax.random.normal(ks[4], (1, C), jnp.float32),
        "b2": 0.1 * jax.random.normal(ks[5], (1, C), jnp.float32),
        "g2": jnp.ones((1, C), jnp.float32),
        "be2": jnp.zeros((1, C), jnp.float32),
        "lt2_w": jax.random.normal(ks[6], (1, C), jnp.float32) / jnp.sqrt(C),
        "lt2_b": 0.1 * jax.random.normal(ks[7], (1, 1), jnp.float32),
        "lin_w": jax.random.normal(ks[8], (F,), jnp.float32) / jnp.sqrt(F),
        "lin_b": 0.1 * jax.random.normal(ks[9], (1, 1), jnp.float32),
    }

    # G graphs: node features + undirected circulant (ring-with-stride) edges.
    x = jax.random.normal(ks[10], (G, N, 1), jnp.float32)
    nodes = jnp.arange(N, dtype=jnp.int32)
    adjs = []
    for g in range(G):
        nxt = (nodes + (g + 1)) % N
        edge_index = jnp.stack([jnp.concatenate([nodes, nxt]),
                                jnp.concatenate([nxt, nodes])], axis=0)
        adjs.append(gcn_norm_adj(edge_index, N))
    adj = jnp.stack(adjs, axis=0)            # [G, N, N]

    out = gnn_pallas(adj, x, params, batch=B, num_features=F, hidden=C)
    out = jax.block_until_ready(out)

    ref = jnp.stack([gnn_ref(adj[g], x[g], params, B, F) for g in range(G)], axis=0)
    assert out.shape == (G, B, 1)
    assert jnp.allclose(out, ref, atol=1e-3, rtol=1e-3), (out, ref)

    print("KERNEL_OK")
</pallas_src>

<mosaic_0001>
module attributes {stable_mosaic.version = 11 : i64} {
  func.func @_gnn_kernel(%arg0: i32, %arg1: memref<1x128xf32, #tpu.memory_space<vmem>>, %arg2: memref<128x128xf32, #tpu.memory_space<vmem>>, %arg3: memref<128x128xf32, #tpu.memory_space<vmem>>, %arg4: memref<128x128xf32, #tpu.memory_space<vmem>>, %arg5: memref<56x128xf32, #tpu.memory_space<vmem>>, %arg6: memref<1x128xf32, #tpu.memory_space<vmem>>) attributes {dimension_semantics = [#tpu.dimension_semantics<arbitrary>], iteration_bounds = array<i64: 1>, scalar_prefetch = 0 : i64, scratch_operands = 0 : i64, tpu.core_type = #tpu.core_type<tc>, window_params = [{pipeline_mode = #tpu.pipeline_mode<synchronous>, transform_indices = @transform_0, window_bounds = array<i64: 1, 128>}, {pipeline_mode = #tpu.pipeline_mode<synchronous>, transform_indices = @transform_1, window_bounds = array<i64: 128, 128>}, {pipeline_mode = #tpu.pipeline_mode<synchronous>, transform_indices = @transform_2, window_bounds = array<i64: 128, 128>}, {pipeline_mode = #tpu.pipeline_mode<synchronous>, transform_indices = @transform_3, window_bounds = array<i64: 128, 128>}, {pipeline_mode = #tpu.pipeline_mode<synchronous>, transform_indices = @transform_4, window_bounds = array<i64: 56, 128>}, {pipeline_mode = #tpu.pipeline_mode<synchronous>, transform_indices = @transform_5, window_bounds = array<i64: 1, 128>}]} {
    %c0 = arith.constant 0 : index
    %c0_0 = arith.constant 0 : index
    %0 = vector.load %arg1[%c0, %c0_0] : memref<1x128xf32, #tpu.memory_space<vmem>>, vector<1x128xf32>
    %c0_1 = arith.constant 0 : index
    %c0_2 = arith.constant 0 : index
    %1 = vector.load %arg2[%c0_1, %c0_2] : memref<128x128xf32, #tpu.memory_space<vmem>>, vector<128x128xf32>
    %c0_3 = arith.constant 0 : index
    %c0_4 = arith.constant 0 : index
    %2 = vector.load %arg3[%c0_3, %c0_4] : memref<128x128xf32, #tpu.memory_space<vmem>>, vector<128x128xf32>
    %c0_5 = arith.constant 0 : index
    %c0_6 = arith.constant 0 : index
    %3 = vector.load %arg4[%c0_5, %c0_6] : memref<128x128xf32, #tpu.memory_space<vmem>>, vector<128x128xf32>
    %c0_7 = arith.constant 0 : index
    %c0_8 = arith.constant 0 : index
    %4 = vector.load %arg5[%c0_7, %c0_8] : memref<56x128xf32, #tpu.memory_space<vmem>>, vector<56x128xf32>
    %5 = vector.extract_strided_slice %4 {offsets = [0, 0], sizes = [5, 128], strides = [1, 1]} : vector<56x128xf32> to vector<5x128xf32>
    %6 = vector.extract_strided_slice %4 {offsets = [5, 0], sizes = [5, 128], strides = [1, 1]} : vector<56x128xf32> to vector<5x128xf32>
    %7 = vector.extract_strided_slice %4 {offsets = [10, 0], sizes = [5, 128], strides = [1, 1]} : vector<56x128xf32> to vector<5x128xf32>
    %8 = vector.extract_strided_slice %4 {offsets = [15, 0], sizes = [5, 128], strides = [1, 1]} : vector<56x128xf32> to vector<5x128xf32>
    %9 = vector.extract_strided_slice %4 {offsets = [20, 0], sizes = [5, 128], strides = [1, 1]} : vector<56x128xf32> to vector<5x128xf32>
    %10 = vector.extract_strided_slice %4 {offsets = [25, 0], sizes = [5, 128], strides = [1, 1]} : vector<56x128xf32> to vector<5x128xf32>
    %11 = vector.extract_strided_slice %4 {offsets = [30, 0], sizes = [5, 128], strides = [1, 1]} : vector<56x128xf32> to vector<5x128xf32>
    %12 = vector.extract_strided_slice %4 {offsets = [35, 0], sizes = [5, 128], strides = [1, 1]} : vector<56x128xf32> to vector<5x128xf32>
    %13 = vector.extract_strided_slice %4 {offsets = [40, 0], sizes = [5, 128], strides = [1, 1]} : vector<56x128xf32> to vector<5x128xf32>
    %14 = vector.extract_strided_slice %4 {offsets = [45, 0], sizes = [5, 128], strides = [1, 1]} : vector<56x128xf32> to vector<5x128xf32>
    %15 = vector.extract_strided_slice %4 {offsets = [50, 0], sizes = [1, 128], strides = [1, 1]} : vector<56x128xf32> to vector<1x128xf32>
    %16 = vector.extract_strided_slice %4 {offsets = [51, 0], sizes = [1, 128], strides = [1, 1]} : vector<56x128xf32> to vector<1x128xf32>
    %17 = vector.extract_strided_slice %4 {offsets = [52, 0], sizes = [1, 128], strides = [1, 1]} : vector<56x128xf32> to vector<1x128xf32>
    %cst = arith.constant dense<0.000000e+00> : vector<1x128xf32>
    %18 = tpu.matmul %0, %1, %cst {dimension_numbers = #tpu.dot_dimension_numbers<[1], [0], [0], [1], [0, 0, 1, 1], [], []>} : vector<1x128xf32>, vector<128x128xf32>, vector<1x128xf32> -> vector<1x128xf32>
    %19 = vector.broadcast %18 : vector<1x128xf32> to vector<5x128xf32>
    %20 = arith.mulf %5, %19 : vector<5x128xf32>
    %21 = arith.addf %20, %6 : vector<5x128xf32>
    %cst_9 = arith.constant dense<0.000000e+00> : vector<5x128xf32>
    %22 = tpu.matmul %21, %2, %cst_9 {dimension_numbers = #tpu.dot_dimension_numbers<[1], [0], [0], [1], [0, 0, 1, 1], [], []>} : vector<5x128xf32>, vector<128x128xf32>, vector<5x128xf32> -> vector<5x128xf32>
    %23 = arith.subf %21, %22 : vector<5x128xf32>
    %24 = arith.mulf %23, %23 : vector<5x128xf32>
    %cst_10 = arith.constant dense<0.000000e+00> : vector<5x128xf32>
    %25 = tpu.matmul %24, %2, %cst_10 {dimension_numbers = #tpu.dot_dimension_numbers<[1], [0], [0], [1], [0, 0, 1, 1], [], []>} : vector<5x128xf32>, vector<128x128xf32>, vector<5x128xf32> -> vector<5x128xf32>
    %cst_11 = arith.constant 9.99999974E-6 : f32
    %26 = vector.broadcast %cst_11 : f32 to vector<5x128xf32>
    %27 = arith.addf %25, %26 : vector<5x128xf32>
    %28 = math.rsqrt %27 : vector<5x128xf32>
    %29 = arith.mulf %23, %28 : vector<5x128xf32>
    %30 = arith.mulf %29, %7 : vector<5x128xf32>
    %31 = arith.addf %30, %8 : vector<5x128xf32>
    %cst_12 = arith.constant 0.000000e+00 : f32
    %32 = vector.broadcast %cst_12 : f32 to vector<5x128xf32>
    %33 = arith.cmpf oge, %31, %32 : vector<5x128xf32>
    %cst_13 = arith.constant 0.00999999977 : f32
    %34 = vector.broadcast %cst_13 : f32 to vector<5x128xf32>
    %35 = arith.mulf %34, %31 : vector<5x128xf32>
    %36 = arith.select %33, %31, %35 : vector<5x128xi1>, vector<5x128xf32>
    %37 = arith.mulf %36, %9 : vector<5x128xf32>
    %cst_14 = arith.constant dense<0.000000e+00> : vector<128xf32>
    %38 = vector.multi_reduction <add>, %37, %cst_14 [0] : vector<5x128xf32> to vector<128xf32>
    %39 = vector.shape_cast %38 : vector<128xf32> to vector<1x128xf32>
    %40 = arith.addf %39, %15 : vector<1x128xf32>
    %cst_15 = arith.constant 0.000000e+00 : f32
    %41 = vector.broadcast %cst_15 : f32 to vector<1x128xf32>
    %42 = arith.cmpf oge, %40, %41 : vector<1x128xf32>
    %cst_16 = arith.constant 0.00999999977 : f32
    %43 = vector.broadcast %cst_16 : f32 to vector<1x128xf32>
    %44 = arith.mulf %43, %40 : vector<1x128xf32>
    %45 = arith.select %42, %40, %44 : vector<1x128xi1>, vector<1x128xf32>
    %cst_17 = arith.constant dense<0.000000e+00> : vector<1x128xf32>
    %46 = tpu.matmul %45, %1, %cst_17 {dimension_numbers = #tpu.dot_dimension_numbers<[1], [0], [0], [1], [0, 0, 1, 1], [], []>} : vector<1x128xf32>, vector<128x128xf32>, vector<1x128xf32> -> vector<1x128xf32>
    %47 = vector.broadcast %46 : vector<1x128xf32> to vector<5x128xf32>
    %48 = arith.mulf %10, %47 : vector<5x128xf32>
    %49 = arith.addf %48, %11 : vector<5x128xf32>
    %cst_18 = arith.constant dense<0.000000e+00> : vector<5x128xf32>
    %50 = tpu.matmul %49, %2, %cst_18 {dimension_numbers = #tpu.dot_dimension_numbers<[1], [0], [0], [1], [0, 0, 1, 1], [], []>} : vector<5x128xf32>, vector<128x128xf32>, vector<5x128xf32> -> vector<5x128xf32>
    %51 = arith.subf %49, %50 : vector<5x128xf32>
    %52 = arith.mulf %51, %51 : vector<5x128xf32>
    %cst_19 = arith.constant dense<0.000000e+00> : vector<5x128xf32>
    %53 = tpu.matmul %52, %2, %cst_19 {dimension_numbers = #tpu.dot_dimension_numbers<[1], [0], [0], [1], [0, 0, 1, 1], [], []>} : vector<5x128xf32>, vector<128x128xf32>, vector<5x128xf32> -> vector<5x128xf32>
    %cst_20 = arith.constant 9.99999974E-6 : f32
    %54 = vector.broadcast %cst_20 : f32 to vector<5x128xf32>
    %55 = arith.addf %53, %54 : vector<5x128xf32>
    %56 = math.rsqrt %55 : vector<5x128xf32>
    %57 = arith.mulf %51, %56 : vector<5x128xf32>
    %58 = arith.mulf %57, %12 : vector<5x128xf32>
    %59 = arith.addf %58, %13 : vector<5x128xf32>
    %cst_21 = arith.constant 0.000000e+00 : f32
    %60 = vector.broadcast %cst_21 : f32 to vector<5x128xf32>
    %61 = arith.cmpf oge, %59, %60 : vector<5x128xf32>
    %cst_22 = arith.constant 0.00999999977 : f32
    %62 = vector.broadcast %cst_22 : f32 to vector<5x128xf32>
    %63 = arith.mulf %62, %59 : vector<5x128xf32>
    %64 = arith.select %61, %59, %63 : vector<5x128xi1>, vector<5x128xf32>
    %65 = arith.mulf %64, %14 : vector<5x128xf32>
    %cst_23 = arith.constant dense<0.000000e+00> : vector<128xf32>
    %66 = vector.multi_reduction <add>, %65, %cst_23 [0] : vector<5x128xf32> to vector<128xf32>
    %67 = vector.shape_cast %66 : vector<128xf32> to vector<1x128xf32>
    %68 = arith.addf %67, %16 : vector<1x128xf32>
    %cst_24 = arith.constant 0.000000e+00 : f32
    %69 = vector.broadcast %cst_24 : f32 to vector<1x128xf32>
    %70 = arith.cmpf oge, %68, %69 : vector<1x128xf32>
    %cst_25 = arith.constant 0.00999999977 : f32
    %71 = vector.broadcast %cst_25 : f32 to vector<1x128xf32>
    %72 = arith.mulf %71, %68 : vector<1x128xf32>
    %73 = arith.select %70, %68, %72 : vector<1x128xi1>, vector<1x128xf32>
    %cst_26 = arith.constant dense<0.000000e+00> : vector<1x128xf32>
    %74 = tpu.matmul %73, %3, %cst_26 {dimension_numbers = #tpu.dot_dimension_numbers<[1], [0], [0], [1], [0, 0, 1, 1], [], []>} : vector<1x128xf32>, vector<128x128xf32>, vector<1x128xf32> -> vector<1x128xf32>
    %75 = arith.addf %74, %17 : vector<1x128xf32>
    %cst_27 = arith.constant 0.000000e+00 : f32
    %76 = vector.broadcast %cst_27 : f32 to vector<1x128xf32>
    %77 = arith.cmpf oge, %75, %76 : vector<1x128xf32>
    %cst_28 = arith.constant 0.00999999977 : f32
    %78 = vector.broadcast %cst_28 : f32 to vector<1x128xf32>
    %79 = arith.mulf %78, %75 : vector<1x128xf32>
    %80 = arith.select %77, %75, %79 : vector<1x128xi1>, vector<1x128xf32>
    %c0_29 = arith.constant 0 : index
    %c0_30 = arith.constant 0 : index
    %81 = vector.load %arg6[%c0_29, %c0_30] : memref<1x128xf32, #tpu.memory_space<vmem>>, vector<1x128xf32>
    tpu.vector_store %arg6[%c0_29, %c0_30], %80 {strides = array<i32>} : memref<1x128xf32, #tpu.memory_space<vmem>>, vector<1x128xf32>,
    return
  }
  func.func @transform_0(%arg0: i32) -> (i32, i32) {
    %c0_i32 = arith.constant 0 : i32
    %c0_i32_0 = arith.constant 0 : i32
    %c0_i32_1 = arith.constant 0 : i32
    return %c0_i32, %c0_i32_0 : i32, i32
  }
  func.func @transform_1(%arg0: i32) -> (i32, i32) {
    %c0_i32 = arith.constant 0 : i32
    %c0_i32_0 = arith.constant 0 : i32
    %c0_i32_1 = arith.constant 0 : i32
    return %c0_i32, %c0_i32_0 : i32, i32
  }
  func.func @transform_2(%arg0: i32) -> (i32, i32) {
    %c0_i32 = arith.constant 0 : i32
    %c0_i32_0 = arith.constant 0 : i32
    %c0_i32_1 = arith.constant 0 : i32
    return %c0_i32, %c0_i32_0 : i32, i32
  }
  func.func @transform_3(%arg0: i32) -> (i32, i32) {
    %c0_i32 = arith.constant 0 : i32
    %c0_i32_0 = arith.constant 0 : i32
    %c0_i32_1 = arith.constant 0 : i32
    return %c0_i32, %c0_i32_0 : i32, i32
  }
  func.func @transform_4(%arg0: i32) -> (i32, i32) {
    %c0_i32 = arith.constant 0 : i32
    %c0_i32_0 = arith.constant 0 : i32
    %c0_i32_1 = arith.constant 0 : i32
    return %c0_i32, %c0_i32_0 : i32, i32
  }
  func.func @transform_5(%arg0: i32) -> (i32, i32) {
    %c0_i32 = arith.constant 0 : i32
    %c0_i32_0 = arith.constant 0 : i32
    %c0_i32_1 = arith.constant 0 : i32
    return %c0_i32, %c0_i32_0 : i32, i32
  }
}

</mosaic_0001>

<bundles_post_ra>
// kernel: squeeze.7
= control target key start
LH: loop header
LB: loop body
LE: loop exit
PB: predicated region body
PF: predicated region fallthrough
CT: control target
= control target key end

     0   :  { %s40_s8 = smov 122   ;;  %vm8_vm0 = vcmask 15360   ;;  %s41_s9 = smov 124   ;;  %s58_s0 = inlined_call_operand.vmem [shape: f32[8], index: 0, kind: input, shape index: {}]   ;;  %s59_s1 = inlined_call_operand.vmem [shape: f32[4,2,1], index: 1, kind: output, shape index: {}]  }
   0x1   :  { %v5_v0 = vld [vmem:[%s58_s0] sm:$0x1]  ;;  %s39_s0 = smov 126  }
   0x2   :  { %6 = vst [vmem:[#allocation1] sm:$0x1] %v5_v0 }
   0x9   :  { %v10_v1 = vld [vmem:[#allocation1] sm:$0x1]  }
   0xa   :  { %v22_v2 = vld [vmem:[#allocation1] sm:$0x1]   ;;  %11 = vrot.lane.b32.xlu0 %v10_v1, %s39_s0 }
   0xb   :  { %23 = vrot.lane.b32.xlu1 %v22_v2, %s40_s8  ;;  %v7_v3 = vld [vmem:[#allocation1] sm:$0x1]  }
   0xc   :  { %v16_v4 = vld [vmem:[#allocation1] sm:$0x1]   ;;  %9 = vst.msk [vmem:[#allocation0] sm:$0x1] %vm8_vm0, %v7_v3  }
   0xe   :  { %17 = vrot.lane.b32.xlu0 %v16_v4, %s41_s9 }
  0x7c   :  { %v12_v5 = vpop.permute.xlu0 %11  }
  0x7d   :  { %v24_v6 = vpop.permute.xlu1 %23   ;;  %15 = vst.msk [vmem:[#allocation0 + $0x1] sm:$0x1] %vm8_vm0, %v12_v5  }
  0x7e   :  { %27 = vst.msk [vmem:[#allocation0 + $0x3] sm:$0x1] %vm8_vm0, %v24_v6  }
  0x80   :  { %v18_v7 = vpop.permute.xlu0 %17  }
  0x81   :  { %21 = vst.msk [vmem:[#allocation0 + $0x2] sm:$0x1] %vm8_vm0, %v18_v7  }
  0x88   :  { %v32_v8 = vld [vmem:[#allocation0] sm:$0xf] }
  0x89   :  { %35 = vst [vmem:[%s59_s1] sm:$0xf] %v32_v8 }

// kernel: gnn_pallas.1
= control target key start
LH: loop header
LB: loop body
LE: loop exit
PB: predicated region body
PF: predicated region fallthrough
CT: control target
= control target key end

     0   :  { %v1057_v0 = vmov 0.0   ;;  %vm1058_vm0 = vmmov 0   ;;  %v146_v34 = vlaneseq  ;;  %vm153_vm1 = vcmask 1042432   ;;  %s1578_s1 = inlined_call_operand.vmem [shape: f32[128,128], index: 1, kind: input, shape index: {}]   ;;  %s1579_s2 = inlined_call_operand.vmem [shape: f32[128,128], index: 2, kind: input, shape index: {}]   ;;  %s1580_s0 = inlined_call_operand.vmem [shape: f32[1,128], index: 0, kind: input, shape index: {}]   ;;  %s1581_s4 = inlined_call_operand.vmem [shape: f32[56,128], index: 4, kind: input, shape index: {}]   ;;  %s1582_s3 = inlined_call_operand.vmem [shape: f32[128,128], index: 3, kind: input, shape index: {}]   ;;  %s1583_s5 = inlined_call_operand.vmem [shape: f32[1,128], index: 5, kind: output, shape index: {}]  }
   0x1   :  { %806 = vmatprep.subr.mxu0 %v1057_v0  ;;  %v1093_v1 = vld [vmem:[%s1578_s1 + $0x78] sm:$0xff]  ;;  %v1098_v2 = vld [vmem:[%s1578_s1 + $0x70] sm:$0xff]  ;;  %838 = vmatprep.mubr.msk.f32.mxu0 %vm1058_vm0, %v1057_v0  ;;  %v1108_v3 = vld [vmem:[%s1578_s1 + $0x68] sm:$0xff]  ;;  %vm307_vm2 = vcmask 1040384   ;;  %vm317_vm3 = vcmask 1043456   ;;  %vm323_vm5 = vcmask 1044480  }
   0x2   :  { %807 = vmatpush3.msra.mxu0 %v1093_v1  ;;  %841 = vmatprep.subr.mxu1 %v1057_v0  ;;  %v1117_v4 = vld [vmem:[%s1578_s1 + $0x60] sm:$0xff]  ;;  %v1123_v5 = vld [vmem:[%s1579_s2 + $0x78] sm:$0xff]  ;;  %v1135_v7 = vld [vmem:[%s1579_s2 + $0x70] sm:$0xff]  ;;  %v1356_v35 = vshrl.u32 %v146_v34, 7 }
   0x3   :  { %808 = vmatprep.subr.mxu0 %v1057_v0  ;;  %873 = vmatprep.mubr.msk.f32.mxu1 %vm1058_vm0, %v1057_v0  ;;  %v1129_v6 = vld [vmem:[%s1578_s1 + $0x58] sm:$0xff]  ;;  %v1142_v8 = vld [vmem:[%s1579_s2 + $0x68] sm:$0xff]  ;;  %v1148_v9 = vld [vmem:[%s1578_s1 + $0x50] sm:$0xff] }
   0x4   :  { %809 = vmatpush3.msra.mxu0 %v1098_v2  ;;  %842 = vmatpush3.msra.mxu1 %v1123_v5  ;;  %v1156_v10 = vld [vmem:[%s1579_s2 + $0x60] sm:$0xff]  ;;  %v1162_v11 = vld [vmem:[%s1578_s1 + $0x48] sm:$0xff]  ;;  %v1170_v12 = vld [vmem:[%s1579_s2 + $0x58] sm:$0xff]  ;;  %v148_v38 = vsub.s32 0, %v1356_v35 }
   0x5   :  { %810 = vmatprep.subr.mxu0 %v1057_v0  ;;  %843 = vmatprep.subr.mxu1 %v1057_v0  ;;  %v1176_v13 = vld [vmem:[%s1578_s1 + $0x40] sm:$0xff]  ;;  %v1184_v14 = vld [vmem:[%s1579_s2 + $0x50] sm:$0xff]  ;;  %v1190_v15 = vld [vmem:[%s1578_s1 + $0x38] sm:$0xff] }
   0x6   :  { %811 = vmatpush3.msra.mxu0 %v1108_v3  ;;  %844 = vmatpush3.msra.mxu1 %v1135_v7  ;;  %v1198_v16 = vld [vmem:[%s1579_s2 + $0x48] sm:$0xff]  ;;  %v1204_v17 = vld [vmem:[%s1578_s1 + $0x30] sm:$0xff]  ;;  %v1212_v18 = vld [vmem:[%s1579_s2 + $0x40] sm:$0xff] }
   0x7   :  { %812 = vmatprep.subr.mxu0 %v1057_v0  ;;  %845 = vmatprep.subr.mxu1 %v1057_v0  ;;  %v1218_v19 = vld [vmem:[%s1578_s1 + $0x28] sm:$0xff]  ;;  %v1226_v20 = vld [vmem:[%s1579_s2 + $0x38] sm:$0xff]  ;;  %v1232_v21 = vld [vmem:[%s1578_s1 + $0x20] sm:$0xff] }
   0x8   :  { %813 = vmatpush3.msra.mxu0 %v1117_v4  ;;  %846 = vmatpush3.msra.mxu1 %v1142_v8  ;;  %v1240_v22 = vld [vmem:[%s1579_s2 + $0x30] sm:$0xff]  ;;  %v1246_v23 = vld [vmem:[%s1578_s1 + $0x18] sm:$0xff]  ;;  %v1254_v24 = vld [vmem:[%s1579_s2 + $0x28] sm:$0xff] }
   0x9   :  { %814 = vmatprep.subr.mxu0 %v1057_v0  ;;  %847 = vmatprep.subr.mxu1 %v1057_v0  ;;  %v1260_v25 = vld [vmem:[%s1578_s1 + $0x10] sm:$0xff]  ;;  %v1268_v26 = vld [vmem:[%s1579_s2 + $0x20] sm:$0xff]  ;;  %v1274_v27 = vld [vmem:[%s1578_s1 + $0x8] sm:$0xff] }
   0xa   :  { %815 = vmatpush3.msra.mxu0 %v1129_v6  ;;  %848 = vmatpush3.msra.mxu1 %v1156_v10  ;;  %v1283_v28 = vld [vmem:[%s1578_s1] sm:$0xff]  ;;  %v1323_v30 = vld [vmem:[%s1579_s2 + $0x18] sm:$0xff]  ;;  %v1331_v31 = vld [vmem:[%s1579_s2 + $0x10] sm:$0xff] }
   0xb   :  { %816 = vmatprep.subr.mxu0 %v1057_v0  ;;  %849 = vmatprep.subr.mxu1 %v1057_v0  ;;  %v20_v29 = vld [vmem:[%s1580_s0] sm:$0x1]  ;;  %v1340_v32 = vld [vmem:[%s1579_s2 + $0x8] sm:$0xff]  ;;  %v71_v54 = vld [vmem:[%s1581_s4 + $0x10] sm:$0xff] }
   0xc   :  { %817 = vmatpush3.msra.mxu0 %v1148_v9  ;;  %850 = vmatpush3.msra.mxu1 %v1170_v12  ;;  %v1345_v33 = vld [vmem:[%s1579_s2] sm:$0xff]  ;;  %v1364_v37 = vld [vmem:[%s1581_s4 + $0x8] sm:$0xff]  ;;  %v309_v56 = vrot.slane %v71_v54, 7  ;;  %v1447_v59 = vld [vmem:[%s1581_s4 + $0x18] sm:$0xff]  ;;  %v318_v62 = vrot.slane %v71_v54, 4 }
   0xd   :  { %818 = vmatprep.subr.mxu0 %v1057_v0  ;;  %851 = vmatprep.subr.mxu1 %v1057_v0  ;;  %v69_v36 = vld [vmem:[%s1581_s4] sm:$0xff]  ;;  %v155_v40 = vrot.slane %v1364_v37, 5  ;;  %v308_v55 = vrot.slane %v1364_v37, 7  ;;  %v303_v57 = vrot.slane %v1364_v37, 2  ;;  %v68_v35 = vld [vmem:[%s1582_s3 + $0x78] sm:$0xff]  ;;  %v66_v37 = vld [vmem:[%s1582_s3 + $0x68] sm:$0xff] }
   0xe   :  { %819 = vmatpush3.msra.mxu0 %v1162_v11  ;;  %852 = vmatpush3.msra.mxu1 %v1184_v14  ;;  %v154_v39 = vrot.slane %v69_v36, 5 }
   0xf   :  { %820 = vmatprep.subr.mxu0 %v1057_v0  ;;  %853 = vmatprep.subr.mxu1 %v1057_v0  ;;  %v310_v61 = vsel %vm307_vm2, %v308_v55, %v309_v56  ;;  %v74_v55 = vld [vmem:[%s1581_s4 + $0x28] sm:$0xff] }
  0x10   :  { %821 = vmatpush3.msra.mxu0 %v1176_v13  ;;  %854 = vmatpush3.msra.mxu1 %v1198_v16  ;;  %v156_v44 = vsel %vm153_vm1, %v154_v39, %v155_v40  ;;  %v64_v39 = vld [vmem:[%s1582_s3 + $0x58] sm:$0xff]  ;;  %v63_v40 = vld [vmem:[%s1582_s3 + $0x50] sm:$0xff] }
  0x11   :  { %822 = vmatprep.subr.mxu0 %v1057_v0  ;;  %855 = vmatprep.subr.mxu1 %v1057_v0 }
  0x12   :  { %823 = vmatpush3.msra.mxu0 %v1190_v15  ;;  %856 = vmatpush3.msra.mxu1 %v1212_v18 }
  0x13   :  { %824 = vmatprep.subr.mxu0 %v1057_v0  ;;  %857 = vmatprep.subr.mxu1 %v1057_v0 }
  0x14   :  { %825 = vmatpush3.msra.mxu0 %v1204_v17  ;;  %858 = vmatpush3.msra.mxu1 %v1226_v20 }
  0x15   :  { %826 = vmatprep.subr.mxu0 %v1057_v0  ;;  %859 = vmatprep.subr.mxu1 %v1057_v0 }
  0x16   :  { %827 = vmatpush3.msra.mxu0 %v1218_v19  ;;  %860 = vmatpush3.msra.mxu1 %v1240_v22 }
  0x17   :  { %828 = vmatprep.subr.mxu0 %v1057_v0  ;;  %861 = vmatprep.subr.mxu1 %v1057_v0 }
  0x18   :  { %829 = vmatpush3.msra.mxu0 %v1232_v21  ;;  %862 = vmatpush3.msra.mxu1 %v1254_v24 }
  0x19   :  { %830 = vmatprep.subr.mxu0 %v1057_v0  ;;  %863 = vmatprep.subr.mxu1 %v1057_v0 }
  0x1a   :  { %831 = vmatpush3.msra.mxu0 %v1246_v23  ;;  %864 = vmatpush3.msra.mxu1 %v1268_v26 }
  0x1b   :  { %832 = vmatprep.subr.mxu0 %v1057_v0  ;;  %865 = vmatprep.subr.mxu1 %v1057_v0 }
  0x1c   :  { %833 = vmatpush3.msra.mxu0 %v1260_v25  ;;  %866 = vmatpush3.msra.mxu1 %v1323_v30 }
  0x1d   :  { %834 = vmatprep.subr.mxu0 %v1057_v0  ;;  %867 = vmatprep.subr.mxu1 %v1057_v0 }
  0x1e   :  { %835 = vmatpush3.msra.mxu0 %v1274_v27  ;;  %868 = vmatpush3.msra.mxu1 %v1331_v31 }
  0x1f   :  { %836 = vmatprep.subr.mxu0 %v1057_v0  ;;  %869 = vmatprep.subr.mxu1 %v1057_v0 }
  0x20   :  { %837 = vmatpush3.msra.mxu0 %v1283_v28  ;;  %870 = vmatpush3.msra.mxu1 %v1340_v32 }
  0x21   :  { %839 = vmatmul.mubr.f32.vlgmr.msra.gmra.mxu0 %v20_v29  ;;  %876 = vmatprep.subr.mxu0 %v1057_v0 }
  0x22   :  { %877 = vmatpush3.msra.mxu0 %v1123_v5  ;;  %908 = vmatprep.mubr.msk.f32.mxu0 %vm1058_vm0, %v1057_v0 }
  0x23   :  { %878 = vmatprep.subr.mxu0 %v1057_v0  ;;  %871 = vmatprep.subr.mxu1 %v1057_v0 }
  0x24   :  { %879 = vmatpush3.msra.mxu0 %v1135_v7  ;;  %872 = vmatpush3.msra.mxu1 %v1345_v33 }
  0x25   :  { %880 = vmatprep.subr.mxu0 %v1057_v0  ;;  %911 = vmatprep.subr.mxu1 %v1057_v0 }
  0x26   :  { %881 = vmatpush3.msra.mxu0 %v1142_v8 }
  0x27   :  { %882 = vmatprep.subr.mxu0 %v1057_v0 }
  0x28   :  { %883 = vmatpush3.msra.mxu0 %v1156_v10 }
  0x29   :  { %884 = vmatprep.subr.mxu0 %v1057_v0 }
  0x2a   :  { %885 = vmatpush3.msra.mxu0 %v1170_v12 }
  0x2b   :  { %886 = vmatprep.subr.mxu0 %v1057_v0 }
  0x2c   :  { %887 = vmatpush3.msra.mxu0 %v1184_v14 }
  0x2d   :  { %888 = vmatprep.subr.mxu0 %v1057_v0 }
  0x2e   :  { %889 = vmatpush3.msra.mxu0 %v1198_v16 }
  0x2f   :  { %890 = vmatprep.subr.mxu0 %v1057_v0 }
  0x30   :  { %891 = vmatpush3.msra.mxu0 %v1212_v18 }
  0x31   :  { %892 = vmatprep.subr.mxu0 %v1057_v0 }
  0x32   :  { %893 = vmatpush3.msra.mxu0 %v1226_v20 }
  0x33   :  { %894 = vmatprep.subr.mxu0 %v1057_v0 }
  0x34   :  { %895 = vmatpush3.msra.mxu0 %v1240_v22 }
  0x35   :  { %896 = vmatprep.subr.mxu0 %v1057_v0 }
  0x36   :  { %897 = vmatpush3.msra.mxu0 %v1254_v24 }
  0x37   :  { %898 = vmatprep.subr.mxu0 %v1057_v0 }
  0x38   :  { %899 = vmatpush3.msra.mxu0 %v1268_v26 }
  0x39   :  { %900 = vmatprep.subr.mxu0 %v1057_v0 }
  0x3a   :  { %901 = vmatpush3.msra.mxu0 %v1323_v30 }
  0x3b   :  { %902 = vmatprep.subr.mxu0 %v1057_v0 }
  0x3c   :  { %903 = vmatpush3.msra.mxu0 %v1331_v31 }
  0x3d   :  { %904 = vmatprep.subr.mxu0 %v1057_v0 }
  0x3e   :  { %905 = vmatpush3.msra.mxu0 %v1340_v32 }
  0x3f   :  { %906 = vmatprep.subr.mxu0 %v1057_v0 }
  0x40   :  { %907 = vmatpush3.msra.mxu0 %v1345_v33 }
  0x41   :  { %946 = vmatprep.subr.mxu0 %v1057_v0 }
  0xe1   :  { %v142_v41 = vpop.f32.mrf.mxu0 }
  0xe2   :  { %v149_v42 = vrot.slane %v142_v41, %v148_v38  ;;  %v62_v41 = vld [vmem:[%s1582_s3 + $0x48] sm:$0xff] }
  0xe3   :  { %v840_v43 = vpop.f32.mrf.mxu0 }
  0xe4   :  { %v150_v45 = vmul.f32 %v149_v42, %v69_v36  ;;  %v67_v36 = vld [vmem:[%s1582_s3 + $0x70] sm:$0xff]  ;;  %v61_v42 = vld [vmem:[%s1582_s3 + $0x40] sm:$0xff]  ;;  %v60_v43 = vld [vmem:[%s1582_s3 + $0x38] sm:$0xff] }
  0xe6   :  { %v158_v46 = vadd.f32 %v156_v44, %v150_v45  ;;  %v59_v44 = vld [vmem:[%s1582_s3 + $0x30] sm:$0xff]  ;;  %v58_v45 = vld [vmem:[%s1582_s3 + $0x28] sm:$0xff] }
  0xe8   :  { %874 = vmatmul.mubr.f32.vlgmr.msra.gmra.mxu1 %v158_v46 }
  0xe9   :  { %912 = vmatpush3.msra.mxu1 %v1093_v1  ;;  %943 = vmatprep.mubr.msk.f32.mxu1 %vm1058_vm0, %v1057_v0  ;;  %v319_v1 = vrot.slane %v1447_v59, 4 }
  0xea   :  { %913 = vmatprep.subr.mxu1 %v1057_v0 }
  0xeb   :  { %914 = vmatpush3.msra.mxu1 %v1098_v2 }
  0xec   :  { %915 = vmatprep.subr.mxu1 %v1057_v0 }
  0xed   :  { %916 = vmatpush3.msra.mxu1 %v1108_v3 }
  0xee   :  { %917 = vmatprep.subr.mxu1 %v1057_v0 }
  0xef   :  { %918 = vmatpush3.msra.mxu1 %v1117_v4  ;;  %v320_v4 = vsel %vm317_vm3, %v318_v62, %v319_v1  ;;  %v586_v62 = vrot.slane %v74_v55, 4 }
  0xf0   :  { %919 = vmatprep.subr.mxu1 %v1057_v0 }
  0xf1   :  { %920 = vmatpush3.msra.mxu1 %v1129_v6 }
  0xf2   :  { %921 = vmatprep.subr.mxu1 %v1057_v0 }
  0xf3   :  { %922 = vmatpush3.msra.mxu1 %v1148_v9 }
  0xf4   :  { %923 = vmatprep.subr.mxu1 %v1057_v0 }
  0xf5   :  { %924 = vmatpush3.msra.mxu1 %v1162_v11 }
  0xf6   :  { %925 = vmatprep.subr.mxu1 %v1057_v0 }
  0xf7   :  { %926 = vmatpush3.msra.mxu1 %v1176_v13 }
  0xf8   :  { %927 = vmatprep.subr.mxu1 %v1057_v0 }
  0xf9   :  { %928 = vmatpush3.msra.mxu1 %v1190_v15 }
  0xfa   :  { %929 = vmatprep.subr.mxu1 %v1057_v0 }
  0xfb   :  { %930 = vmatpush3.msra.mxu1 %v1204_v17 }
  0xfc   :  { %931 = vmatprep.subr.mxu1 %v1057_v0 }
  0xfd   :  { %932 = vmatpush3.msra.mxu1 %v1218_v19 }
  0xfe   :  { %933 = vmatprep.subr.mxu1 %v1057_v0 }
  0xff   :  { %934 = vmatpush3.msra.mxu1 %v1232_v21 }
 0x100   :  { %935 = vmatprep.subr.mxu1 %v1057_v0 }
 0x101   :  { %936 = vmatpush3.msra.mxu1 %v1246_v23  ;;  %v1455_v23 = vld [vmem:[%s1581_s4 + $0x30] sm:$0xff] }
 0x102   :  { %937 = vmatprep.subr.mxu1 %v1057_v0 }
 0x103   :  { %938 = vmatpush3.msra.mxu1 %v1260_v25 }
 0x104   :  { %939 = vmatprep.subr.mxu1 %v1057_v0 }
 0x105   :  { %940 = vmatpush3.msra.mxu1 %v1274_v27 }
 0x106   :  { %941 = vmatprep.subr.mxu1 %v1057_v0 }
 0x107   :  { %942 = vmatpush3.msra.mxu1 %v1283_v28 }
 0x108   :  { %981 = vmatprep.subr.mxu1 %v1057_v0 }
 0x1a8   :  { %v225_v47 = vpop.f32.mrf.mxu1 }
 0x1a9   :  { %v229_v48 = vsub.f32 %v158_v46, %v225_v47  ;;  %v57_v46 = vld [vmem:[%s1582_s3 + $0x20] sm:$0xff]  ;;  %v56_v47 = vld [vmem:[%s1582_s3 + $0x18] sm:$0xff] }
 0x1aa   :  { %v875_v49 = vpop.f32.mrf.mxu1 }
 0x1ab   :  { %v230_v50 = vmul.f32 %v229_v48, %v229_v48  ;;  %v54_v49 = vld [vmem:[%s1582_s3 + $0x8] sm:$0xff] }
 0x1ad   :  { %909 = vmatmul.mubr.f32.vlgmr.msra.gmra.mxu0 %v230_v50  ;;  %v53_v50 = vld [vmem:[%s1582_s3] sm:$0xff] }
 0x1ae   :  { %947 = vmatpush3.msra.mxu0 %v1123_v5  ;;  %978 = vmatprep.mubr.msk.f32.mxu0 %vm1058_vm0, %v1057_v0 }
 0x1af   :  { %948 = vmatprep.subr.mxu0 %v1057_v0 }
 0x1b0   :  { %949 = vmatpush3.msra.mxu0 %v1135_v7 }
 0x1b1   :  { %950 = vmatprep.subr.mxu0 %v1057_v0 }
 0x1b2   :  { %951 = vmatpush3.msra.mxu0 %v1142_v8 }
 0x1b3   :  { %952 = vmatprep.subr.mxu0 %v1057_v0 }
 0x1b4   :  { %953 = vmatpush3.msra.mxu0 %v1156_v10 }
 0x1b5   :  { %954 = vmatprep.subr.mxu0 %v1057_v0 }
 0x1b6   :  { %955 = vmatpush3.msra.mxu0 %v1170_v12 }
 0x1b7   :  { %956 = vmatprep.subr.mxu0 %v1057_v0 }
 0x1b8   :  { %957 = vmatpush3.msra.mxu0 %v1184_v14 }
 0x1b9   :  { %958 = vmatprep.subr.mxu0 %v1057_v0 }
 0x1ba   :  { %959 = vmatpush3.msra.mxu0 %v1198_v16 }
 0x1bb   :  { %960 = vmatprep.subr.mxu0 %v1057_v0 }
 0x1bc   :  { %961 = vmatpush3.msra.mxu0 %v1212_v18 }
 0x1bd   :  { %962 = vmatprep.subr.mxu0 %v1057_v0 }
 0x1be   :  { %963 = vmatpush3.msra.mxu0 %v1226_v20 }
 0x1bf   :  { %964 = vmatprep.subr.mxu0 %v1057_v0 }
 0x1c0   :  { %965 = vmatpush3.msra.mxu0 %v1240_v22 }
 0x1c1   :  { %966 = vmatprep.subr.mxu0 %v1057_v0 }
 0x1c2   :  { %967 = vmatpush3.msra.mxu0 %v1254_v24 }
 0x1c3   :  { %968 = vmatprep.subr.mxu0 %v1057_v0 }
 0x1c4   :  { %969 = vmatpush3.msra.mxu0 %v1268_v26 }
 0x1c5   :  { %970 = vmatprep.subr.mxu0 %v1057_v0 }
 0x1c6   :  { %971 = vmatpush3.msra.mxu0 %v1323_v30 }
 0x1c7   :  { %972 = vmatprep.subr.mxu0 %v1057_v0 }
 0x1c8   :  { %973 = vmatpush3.msra.mxu0 %v1331_v31 }
 0x1c9   :  { %974 = vmatprep.subr.mxu0 %v1057_v0 }
 0x1ca   :  { %975 = vmatpush3.msra.mxu0 %v1340_v32 }
 0x1cb   :  { %976 = vmatprep.subr.mxu0 %v1057_v0 }
 0x1cc   :  { %977 = vmatpush3.msra.mxu0 %v1345_v33 }
 0x1cd   :  { %1016 = vmatprep.subr.mxu0 %v1057_v0 }
 0x26d   :  { %v297_v51 = vpop.f32.mrf.mxu0 }
 0x26e   :  { %v298_v52 = vadd.f32 1e-05, %v297_v51 }
 0x26f   :  { %v910_v53 = vpop.f32.mrf.mxu0 }
 0x270   :  { %1053 = vrsqrt.f32 %v298_v52 }
 0x27d   :  { %v1054_v58 = vpop.eup %1053 }
 0x27e   :  { %v302_v60 = vmul.f32 %v1054_v58, %v229_v48  ;;  %v55_v48 = vld [vmem:[%s1582_s3 + $0x10] sm:$0xff] }
 0x280   :  { %v305_v63 = vmul.f32 %v303_v57, %v302_v60  ;;  %v587_v60 = vrot.slane %v1455_v23, 4 }
 0x282   :  { %v312_v2 = vadd.f32 %v310_v61, %v305_v63  ;;  %v588_v1 = vsel %vm317_vm3, %v586_v62, %v587_v60 }
 0x284   :  { %vm313_vm4 = vcmp.ge.f32.partialorder %v312_v2, 0.0  ;;  %v314_v3 = vmul.f32 0.01, %v312_v2 }
 0x286   :  { %v315_v6 = vsel %vm313_vm4, %v312_v2, %v314_v3 }
 0x287   :  { %v322_v9 = vmul.f32 %v320_v4, %v315_v6 }
 0x289   :  { %v324_v11 = vsel %vm323_vm5, %v322_v9, 0.0 }
 0x28a   :  { %v325_v13 = vrot.slane %v324_v11, 4 }
 0x28c   :  { %v326_v15 = vadd.f32 %v325_v13, %v324_v11 }
 0x28e   :  { %v327_v17 = vrot.slane %v326_v15, 2 }
 0x290   :  { %v328_v19 = vadd.f32 %v327_v17, %v326_v15 }
 0x292   :  { %v329_v21 = vrot.slane %v328_v19, 1 }
 0x294   :  { %v330_v25 = vadd.f32 %v329_v21, %v328_v19 }
 0x296   :  { %v331_v27 = vadd.f32 %v330_v25, %v1455_v23 }
 0x298   :  { %vm332_vm6 = vcmp.ge.f32.partialorder %v331_v27, 0.0  ;;  %v333_v28 = vmul.f32 0.01, %v331_v27 }
 0x29a   :  { %v334_v29 = vsel %vm332_vm6, %v331_v27, %v333_v28 }
 0x29b   :  { %v336_v34 = vrot.slane %v334_v29, 2 }
 0x29d   :  { %944 = vmatmul.mubr.f32.vlgmr.msra.gmra.mxu1 %v336_v34 }
 0x29e   :  { %982 = vmatpush3.msra.mxu1 %v1123_v5  ;;  %1013 = vmatprep.mubr.msk.f32.mxu1 %vm1058_vm0, %v1057_v0  ;;  %v1494_v5 = vld [vmem:[%s1581_s4 + $0x20] sm:$0xff] }
 0x29f   :  { %983 = vmatprep.subr.mxu1 %v1057_v0  ;;  %v575_v57 = vrot.slane %v1494_v5, 2 }
 0x2a0   :  { %984 = vmatpush3.msra.mxu1 %v1135_v7  ;;  %v414_v7 = vrot.slane %v1447_v59, 5 }
 0x2a1   :  { %985 = vmatprep.subr.mxu1 %v1057_v0 }
 0x2a2   :  { %986 = vmatpush3.msra.mxu1 %v1142_v8  ;;  %v415_v8 = vrot.slane %v1494_v5, 5 }
 0x2a3   :  { %987 = vmatprep.subr.mxu1 %v1057_v0 }
 0x2a4   :  { %988 = vmatpush3.msra.mxu1 %v1156_v10 }
 0x2a5   :  { %989 = vmatprep.subr.mxu1 %v1057_v0 }
 0x2a6   :  { %990 = vmatpush3.msra.mxu1 %v1170_v12 }
 0x2a7   :  { %991 = vmatprep.subr.mxu1 %v1057_v0 }
 0x2a8   :  { %992 = vmatpush3.msra.mxu1 %v1184_v14  ;;  %v416_v14 = vsel %vm153_vm1, %v414_v7, %v415_v8 }
 0x2a9   :  { %993 = vmatprep.subr.mxu1 %v1057_v0 }
 0x2aa   :  { %994 = vmatpush3.msra.mxu1 %v1198_v16 }
 0x2ab   :  { %995 = vmatprep.subr.mxu1 %v1057_v0 }
 0x2ac   :  { %996 = vmatpush3.msra.mxu1 %v1212_v18 }
 0x2ad   :  { %997 = vmatprep.subr.mxu1 %v1057_v0 }
 0x2ae   :  { %998 = vmatpush3.msra.mxu1 %v1226_v20 }
 0x2af   :  { %999 = vmatprep.subr.mxu1 %v1057_v0 }
 0x2b0   :  { %1000 = vmatpush3.msra.mxu1 %v1240_v22 }
 0x2b1   :  { %1001 = vmatprep.subr.mxu1 %v1057_v0 }
 0x2b2   :  { %1002 = vmatpush3.msra.mxu1 %v1254_v24 }
 0x2b3   :  { %1003 = vmatprep.subr.mxu1 %v1057_v0 }
 0x2b4   :  { %1004 = vmatpush3.msra.mxu1 %v1268_v26 }
 0x2b5   :  { %1005 = vmatprep.subr.mxu1 %v1057_v0 }
 0x2b6   :  { %1006 = vmatpush3.msra.mxu1 %v1323_v30 }
 0x2b7   :  { %1007 = vmatprep.subr.mxu1 %v1057_v0 }
 0x2b8   :  { %1008 = vmatpush3.msra.mxu1 %v1331_v31 }
 0x2b9   :  { %1009 = vmatprep.subr.mxu1 %v1057_v0 }
 0x2ba   :  { %1010 = vmatpush3.msra.mxu1 %v1340_v32 }
 0x2bb   :  { %1011 = vmatprep.subr.mxu1 %v1057_v0 }
 0x2bc   :  { %1012 = vmatpush3.msra.mxu1 %v1345_v33 }
 0x35d   :  { %v404_v10 = vpop.f32.mrf.mxu1 }
 0x35e   :  { %v411_v12 = vrot.slane %v404_v10, %v148_v38  ;;  %v65_v38 = vld [vmem:[%s1582_s3 + $0x60] sm:$0xff] }
 0x35f   :  { %v945_v16 = vpop.f32.mrf.mxu1 }
 0x360   :  { %v412_v18 = vmul.f32 %v411_v12, %v1447_v59  ;;  %v579_v59 = vrot.slane %v74_v55, 7 }
 0x362   :  { %v418_v20 = vadd.f32 %v416_v14, %v412_v18 }
 0x364   :  { %v420_v22 = vrot.slane %v418_v20, 1 }
 0x366   :  { %979 = vmatmul.mubr.f32.vlgmr.msra.gmra.mxu0 %v420_v22 }
 0x367   :  { %1048 = vmatprep.mubr.msk.f32.mxu0 %vm1058_vm0, %v1057_v0  ;;  %1017 = vmatpush3.msra.mxu0 %v68_v35 }
 0x368   :  { %1018 = vmatprep.subr.mxu0 %v1057_v0 }
 0x369   :  { %1019 = vmatpush3.msra.mxu0 %v67_v36 }
 0x36a   :  { %1020 = vmatprep.subr.mxu0 %v1057_v0 }
 0x36b   :  { %1021 = vmatpush3.msra.mxu0 %v66_v37 }
 0x36c   :  { %1022 = vmatprep.subr.mxu0 %v1057_v0 }
 0x36d   :  { %1023 = vmatpush3.msra.mxu0 %v65_v38 }
 0x36e   :  { %1024 = vmatprep.subr.mxu0 %v1057_v0 }
 0x36f   :  { %1025 = vmatpush3.msra.mxu0 %v64_v39 }
 0x370   :  { %1026 = vmatprep.subr.mxu0 %v1057_v0 }
 0x371   :  { %1027 = vmatpush3.msra.mxu0 %v63_v40 }
 0x372   :  { %1028 = vmatprep.subr.mxu0 %v1057_v0 }
 0x373   :  { %1029 = vmatpush3.msra.mxu0 %v62_v41 }
 0x374   :  { %1030 = vmatprep.subr.mxu0 %v1057_v0 }
 0x375   :  { %1031 = vmatpush3.msra.mxu0 %v61_v42 }
 0x376   :  { %1032 = vmatprep.subr.mxu0 %v1057_v0 }
 0x377   :  { %1033 = vmatpush3.msra.mxu0 %v60_v43 }
 0x378   :  { %1034 = vmatprep.subr.mxu0 %v1057_v0 }
 0x379   :  { %1035 = vmatpush3.msra.mxu0 %v59_v44 }
 0x37a   :  { %1036 = vmatprep.subr.mxu0 %v1057_v0 }
 0x37b   :  { %1037 = vmatpush3.msra.mxu0 %v58_v45 }
 0x37c   :  { %1038 = vmatprep.subr.mxu0 %v1057_v0 }
 0x37d   :  { %1039 = vmatpush3.msra.mxu0 %v57_v46 }
 0x37e   :  { %1040 = vmatprep.subr.mxu0 %v1057_v0 }
 0x37f   :  { %1041 = vmatpush3.msra.mxu0 %v56_v47 }
 0x380   :  { %1042 = vmatprep.subr.mxu0 %v1057_v0 }
 0x381   :  { %1043 = vmatpush3.msra.mxu0 %v55_v48 }
 0x382   :  { %1044 = vmatprep.subr.mxu0 %v1057_v0 }
 0x383   :  { %1045 = vmatpush3.msra.mxu0 %v54_v49 }
 0x384   :  { %1046 = vmatprep.subr.mxu0 %v1057_v0 }
 0x385   :  { %1047 = vmatpush3.msra.mxu0 %v53_v50 }
 0x426   :  { %v488_v24 = vpop.f32.mrf.mxu0 }
 0x427   :  { %v493_v26 = vrot.slane %v488_v24, 7 }
 0x428   :  { %v980_v30 = vpop.f32.mrf.mxu0 }
 0x429   :  { %v495_v31 = vsub.f32 %v418_v20, %v493_v26 }
 0x42b   :  { %v496_v32 = vmul.f32 %v495_v31, %v495_v31 }
 0x42d   :  { %v498_v33 = vrot.slane %v496_v32, 1 }
 0x42f   :  { %1014 = vmatmul.mubr.f32.vlgmr.msra.gmra.mxu1 %v498_v33 }
 0x4ef   :  { %v566_v51 = vpop.f32.mrf.mxu1 }
 0x4f0   :  { %v567_v52 = vadd.f32 1e-05, %v566_v51 }
 0x4f1   :  { %v1015_v53 = vpop.f32.mrf.mxu1 }
 0x4f2   :  { %1055 = vrsqrt.f32 %v567_v52 }
 0x4ff   :  { %v1056_v54 = vpop.eup %1055 }
 0x500   :  { %v572_v56 = vrot.slane %v1056_v54, 7 }
 0x502   :  { %v574_v58 = vmul.f32 %v572_v56, %v495_v31 }
 0x504   :  { %v577_v61 = vmul.f32 %v575_v57, %v574_v58 }
 0x506   :  { %v581_v0 = vadd.f32 %v579_v59, %v577_v61 }
 0x508   :  { %vm582_vm7 = vcmp.ge.f32.partialorder %v581_v0, 0.0  ;;  %v583_v63 = vmul.f32 0.01, %v581_v0 }
 0x50a   :  { %v584_v2 = vsel %vm582_vm7, %v581_v0, %v583_v63 }
 0x50b   :  { %v590_v3 = vmul.f32 %v588_v1, %v584_v2 }
 0x50d   :  { %v592_v4 = vrot.slane %v590_v3, 1 }
 0x50f   :  { %v594_v6 = vsel %vm323_vm5, %v592_v4, 0.0 }
 0x510   :  { %v595_v9 = vrot.slane %v594_v6, 4 }
 0x512   :  { %v596_v11 = vadd.f32 %v595_v9, %v594_v6 }
 0x514   :  { %v597_v13 = vrot.slane %v596_v11, 2 }
 0x516   :  { %v598_v15 = vadd.f32 %v597_v13, %v596_v11 }
 0x518   :  { %v599_v17 = vrot.slane %v598_v15, 1 }
 0x51a   :  { %v600_v19 = vadd.f32 %v599_v17, %v598_v15 }
 0x51c   :  { %v601_v21 = vadd.f32 %v600_v19, %v1455_v23 }
 0x51e   :  { %vm602_vm8 = vcmp.ge.f32.partialorder %v601_v21, 0.0  ;;  %v603_v25 = vmul.f32 0.01, %v601_v21 }
 0x520   :  { %v604_v27 = vsel %vm602_vm8, %v601_v21, %v603_v25 }
 0x521   :  { %v606_v28 = vrot.slane %v604_v27, 3 }
 0x523   :  { %1049 = vmatmul.mubr.f32.vlgmr.msra.gmra.mxu0 %v606_v28 }
 0x5e3   :  { %v675_v29 = vpop.f32.mrf.mxu0 }
 0x5e4   :  { %v676_v34 = vadd.f32 %v675_v29, %v587_v60 }
 0x5e5   :  { %v1050_v5 = vpop.f32.mrf.mxu0 }
 0x5e6   :  { %vm679_vm9 = vcmp.ge.f32.partialorder %v676_v34, 0.0  ;;  %v680_v7 = vmul.f32 0.01, %v676_v34 }
 0x5e8   :  { %v681_v8 = vsel %vm679_vm9, %v676_v34, %v680_v7 }
 0x5e9   :  { %682 = vst [vmem:[%s1583_s5] sm:$0x1] %v681_v8 }

</bundles_post_ra>
